<compile_context>
chip_gen: v6e
topology: v6e:2x2x1
jax: 0.10.0
libtpu: 0.0.40
codegen_flags: <defaults>
</compile_context>

<pallas_src>
import functools
import math

import jax
import jax.numpy as jnp
from jax.experimental import pallas as pl
from jax.experimental.pallas import tpu as pltpu


def _actor_kernel(max_action, x_ref, w1_ref, b1_ref, w2_ref, b2_ref,
                  w3t_ref, b3t_ref, o_ref):
    x = x_ref[...].astype(jnp.float32)          # [bb, obs]
    obs = x_ref.shape[-1]

    # ---- Layer 1: obs -> 400.  K is tiny (2): broadcast-multiplies on the
    # VPU instead of a degenerate MXU matmul.
    if obs <= 8:
        w1 = w1_ref[...].astype(jnp.float32)    # [obs, 400]
        h1 = x[:, 0:1] * w1[0:1, :]
        for k in range(1, obs):
            h1 = h1 + x[:, k:k + 1] * w1[k:k + 1, :]
        h1 = h1 + b1_ref[...]
    else:
        h1 = jnp.dot(x.astype(w1_ref.dtype), w1_ref[...],
                     preferred_element_type=jnp.float32) + b1_ref[...]
    h1 = jnp.maximum(h1, 0.0)

    # ---- Layer 2: 400 -> 300 on the MXU.  bf16 operands, f32 accumulation;
    # bias add / ReLU stay in f32 (v5e VPU has no bf16 path).
    h2 = jnp.dot(h1.astype(w2_ref.dtype), w2_ref[...],
                 preferred_element_type=jnp.float32) + b2_ref[...]
    h2 = jnp.maximum(h2, 0.0)

    # ---- Layer 3: 300 -> action_size, computed transposed as [A, bb] so the
    # result (and the final tanh / output store) is lane-dense.
    h3t = jax.lax.dot_general(
        w3t_ref[...], h2.astype(w3t_ref.dtype),
        dimension_numbers=(((1,), (1,)), ((), ())),
        preferred_element_type=jnp.float32) + b3t_ref[...]     # [A, bb]

    o_ref[...] = (max_action * jnp.tanh(h3t)).astype(o_ref.dtype)


_GRIDLESS_MAX_B = 256   # below this, skip the pipeline machinery entirely
_MAX_BLOCK_B = 2048     # keeps per-step live VMEM ~8 MB (< scoped default
                        # everywhere, incl. v7x's 64 MiB physical)


def _choose_block_b(B):
    """Fat blocks amortize the ~0.35 us/step overhead; keep >= 2 grid steps
    so the 'parallel' batch axis can shard across v7x's 2 TensorCores."""
    block = _MAX_BLOCK_B
    while block > 256 and B < 2 * block:
        block //= 2
    return block


def actor_forward(x, params, max_action):
    """x: [B, obs_size] float32.
    params: w1/w2 (bf16, [in,out]), b1/b2 (f32, [1,out]),
            w3t (bf16, [A,300]), b3t (f32, [A,1])."""
    w1, b1 = params["w1"], params["b1"]
    w2, b2 = params["w2"], params["b2"]
    w3t, b3t = params["w3t"], params["b3t"]

    B, obs = x.shape
    A = w3t.shape[0]

    # max_action is baked in at trace time (fixed model constant).
    kern = functools.partial(_actor_kernel, float(max_action))

    if B <= _GRIDLESS_MAX_B:
        # Small batch: single invocation, no grid, no pipelining machinery —
        # every operand lives whole in VMEM, single-buffered.
        vmem = lambda: pl.BlockSpec(memory_space=pltpu.MemorySpace.VMEM)
        out_t = pl.pallas_call(
            kern,
            out_shape=jax.ShapeDtypeStruct((A, B), jnp.float32),
            in_specs=[vmem() for _ in range(7)],
            out_specs=vmem(),
        )(x, w1, b1, w2, b2, w3t, b3t)
    else:
        # Large batch: cdiv grid over the batch dimension; pad B up to a
        # multiple of block_b so non-divisible batches never fall back to the
        # whole-array path.  Weights/biases use a constant index_map -> DMAed
        # once, VMEM-resident across all grid steps.
        block_b = _choose_block_b(B)
        grid = pl.cdiv(B, block_b)
        B_pad = grid * block_b
        if B_pad != B:
            x = jnp.pad(x, ((0, B_pad - B), (0, 0)))

        def const_spec(shape):
            return pl.BlockSpec(shape, lambda i: (0,) * len(shape))

        out_t = pl.pallas_call(
            kern,
            out_shape=jax.ShapeDtypeStruct((A, B_pad), jnp.float32),
            grid=(grid,),
            in_specs=[
                pl.BlockSpec((block_b, obs), lambda i: (i, 0)),
                const_spec(w1.shape), const_spec(b1.shape),
                const_spec(w2.shape), const_spec(b2.shape),
                const_spec(w3t.shape), const_spec(b3t.shape),
            ],
            out_specs=pl.BlockSpec((A, block_b), lambda i: (0, i)),
            compiler_params=pltpu.CompilerParams(
                dimension_semantics=("parallel",),
                vmem_limit_bytes=32 << 20),
        )(x, w1, b1, w2, b2, w3t, b3t)
        if B_pad != B:
            out_t = out_t[:, :B]

    # [A, B] -> [B, A] in the wrapper (A is tiny; reshape is free for A == 1).
    return out_t.reshape(B, A) if A == 1 else jnp.transpose(out_t)


def init_actor_params(key, obs_size, action_size):
    """nn.Linear-style init U(-1/sqrt(fan_in), +1/sqrt(fan_in)).
    W1/W2 stored [in, out] bf16; W3 stored pre-transposed as w3t [A, 300]
    bf16 and b3 as b3t [A, 1] f32 (no per-call transpose on the hot path)."""
    dims = [(obs_size, 400), (400, 300), (300, action_size)]
    params = {}
    for idx, (fan_in, fan_out) in enumerate(dims, start=1):
        key, kw, kb = jax.random.split(key, 3)
        bound = 1.0 / math.sqrt(fan_in)
        w = jax.random.uniform(kw, (fan_in, fan_out), jnp.float32,
                               minval=-bound, maxval=bound)
        b = jax.random.uniform(kb, (1, fan_out), jnp.float32,
                               minval=-bound, maxval=bound)
        if idx == 3:
            params["w3t"] = jnp.transpose(w).astype(jnp.bfloat16)   # [A, 300]
            params["b3t"] = jnp.transpose(b)                        # [A, 1]
        else:
            params[f"w{idx}"] = w.astype(jnp.bfloat16)               # bf16
            params[f"b{idx}"] = b                                    # f32
    return params


def actor_reference(x, params, max_action):
    """Pure-JAX f32 reference using the same (bf16-stored) weights."""
    w1 = params["w1"].astype(jnp.float32)
    w2 = params["w2"].astype(jnp.float32)
    w3 = jnp.transpose(params["w3t"]).astype(jnp.float32)   # [300, A]
    b3 = jnp.transpose(params["b3t"])                        # [1, A]
    h1 = jax.nn.relu(x @ w1 + params["b1"])
    h2 = jax.nn.relu(h1 @ w2 + params["b2"])
    return max_action * jnp.tanh(h2 @ w3 + b3)


if __name__ == "__main__":
    # MountainCarContinuous-v0: obs_size=2, action_size=1, max_action=1.0
    obs_size, action_size, max_action = 2, 1, 1.0

    key = jax.random.PRNGKey(0)
    key, kx_small, kx_big = jax.random.split(key, 3)
    params = init_actor_params(key, obs_size, action_size)

    # Small batch -> gridless single-invocation path.
    x_small = jax.random.normal(kx_small, (8, obs_size), jnp.float32)
    out_small = jax.block_until_ready(actor_forward(x_small, params, max_action))
    ref_small = actor_reference(x_small, params, max_action)
    assert out_small.shape == (8, action_size)
    assert jnp.allclose(out_small, ref_small, atol=2e-2, rtol=2e-2), (
        out_small, ref_small)

    # Large, non-divisible batch -> cdiv grid + padding, weights VMEM-resident,
    # batch axis "parallel", lane-dense output.
    x_big = jax.random.normal(kx_big, (600, obs_size), jnp.float32)
    out_big = jax.block_until_ready(actor_forward(x_big, params, max_action))
    ref_big = actor_reference(x_big, params, max_action)
    assert out_big.shape == (600, action_size)
    assert jnp.allclose(out_big, ref_big, atol=2e-2, rtol=2e-2)

    print("KERNEL_OK")
</pallas_src>

<mosaic_0001>
module attributes {stable_mosaic.version = 11 : i64} {
  func.func @_actor_kernel(%arg0: memref<8x2xf32, #tpu.memory_space<vmem>>, %arg1: memref<2x400xbf16, #tpu.memory_space<vmem>>, %arg2: memref<1x400xf32, #tpu.memory_space<vmem>>, %arg3: memref<400x300xbf16, #tpu.memory_space<vmem>>, %arg4: memref<1x300xf32, #tpu.memory_space<vmem>>, %arg5: memref<1x300xbf16, #tpu.memory_space<vmem>>, %arg6: memref<1x1xf32, #tpu.memory_space<vmem>>, %arg7: memref<1x8xf32, #tpu.memory_space<vmem>>) attributes {dimension_semantics = [], scalar_prefetch = 0 : i64, scratch_operands = 0 : i64, tpu.core_type = #tpu.core_type<tc>} {
    %c0 = arith.constant 0 : index
    %c0_0 = arith.constant 0 : index
    %0 = vector.load %arg0[%c0, %c0_0] : memref<8x2xf32, #tpu.memory_space<vmem>>, vector<8x2xf32>
    %c0_1 = arith.constant 0 : index
    %c0_2 = arith.constant 0 : index
    %1 = vector.load %arg1[%c0_1, %c0_2] : memref<2x400xbf16, #tpu.memory_space<vmem>>, vector<2x400xbf16>
    %2 = arith.extf %1 : vector<2x400xbf16> to vector<2x400xf32>
    %3 = vector.extract_strided_slice %0 {offsets = [0, 0], sizes = [8, 1], strides = [1, 1]} : vector<8x2xf32> to vector<8x1xf32>
    %4 = vector.extract_strided_slice %2 {offsets = [0, 0], sizes = [1, 400], strides = [1, 1]} : vector<2x400xf32> to vector<1x400xf32>
    %5 = vector.broadcast %3 : vector<8x1xf32> to vector<8x400xf32>
    %6 = vector.broadcast %4 : vector<1x400xf32> to vector<8x400xf32>
    %7 = arith.mulf %5, %6 : vector<8x400xf32>
    %8 = vector.extract_strided_slice %0 {offsets = [0, 1], sizes = [8, 1], strides = [1, 1]} : vector<8x2xf32> to vector<8x1xf32>
    %9 = vector.extract_strided_slice %2 {offsets = [1, 0], sizes = [1, 400], strides = [1, 1]} : vector<2x400xf32> to vector<1x400xf32>
    %10 = vector.broadcast %8 : vector<8x1xf32> to vector<8x400xf32>
    %11 = vector.broadcast %9 : vector<1x400xf32> to vector<8x400xf32>
    %12 = arith.mulf %10, %11 : vector<8x400xf32>
    %13 = arith.addf %7, %12 : vector<8x400xf32>
    %c0_3 = arith.constant 0 : index
    %c0_4 = arith.constant 0 : index
    %14 = vector.load %arg2[%c0_3, %c0_4] : memref<1x400xf32, #tpu.memory_space<vmem>>, vector<1x400xf32>
    %15 = vector.broadcast %14 : vector<1x400xf32> to vector<8x400xf32>
    %16 = arith.addf %13, %15 : vector<8x400xf32>
    %cst = arith.constant 0.000000e+00 : f32
    %17 = vector.broadcast %cst : f32 to vector<8x400xf32>
    %18 = arith.maximumf %16, %17 : vector<8x400xf32>
    %19 = arith.truncf %18 : vector<8x400xf32> to vector<8x400xbf16>
    %c0_5 = arith.constant 0 : index
    %c0_6 = arith.constant 0 : index
    %20 = vector.load %arg3[%c0_5, %c0_6] : memref<400x300xbf16, #tpu.memory_space<vmem>>, vector<400x300xbf16>
    %cst_7 = arith.constant dense<0.000000e+00> : vector<8x300xf32>
    %21 = tpu.matmul %19, %20, %cst_7 {dimension_numbers = #tpu.dot_dimension_numbers<[1], [0], [0], [1], [0, 0, 1, 1], [], []>} : vector<8x400xbf16>, vector<400x300xbf16>, vector<8x300xf32> -> vector<8x300xf32>
    %c0_8 = arith.constant 0 : index
    %c0_9 = arith.constant 0 : index
    %22 = vector.load %arg4[%c0_8, %c0_9] : memref<1x300xf32, #tpu.memory_space<vmem>>, vector<1x300xf32>
    %23 = vector.broadcast %22 : vector<1x300xf32> to vector<8x300xf32>
    %24 = arith.addf %21, %23 : vector<8x300xf32>
    %cst_10 = arith.constant 0.000000e+00 : f32
    %25 = vector.broadcast %cst_10 : f32 to vector<8x300xf32>
    %26 = arith.maximumf %24, %25 : vector<8x300xf32>
    %c0_11 = arith.constant 0 : index
    %c0_12 = arith.constant 0 : index
    %27 = vector.load %arg5[%c0_11, %c0_12] : memref<1x300xbf16, #tpu.memory_space<vmem>>, vector<1x300xbf16>
    %28 = arith.truncf %26 : vector<8x300xf32> to vector<8x300xbf16>
    %cst_13 = arith.constant dense<0.000000e+00> : vector<1x8xf32>
    %29 = tpu.matmul %27, %28, %cst_13 {dimension_numbers = #tpu.dot_dimension_numbers<[1], [1], [0], [0], [0, 0, 1, 0], [], []>} : vector<1x300xbf16>, vector<8x300xbf16>, vector<1x8xf32> -> vector<1x8xf32>
    %c0_14 = arith.constant 0 : index
    %c0_15 = arith.constant 0 : index
    %30 = vector.load %arg6[%c0_14, %c0_15] : memref<1x1xf32, #tpu.memory_space<vmem>>, vector<1x1xf32>
    %31 = vector.broadcast %30 : vector<1x1xf32> to vector<1x8xf32>
    %32 = arith.addf %29, %31 : vector<1x8xf32>
    %33 = math.tanh %32 : vector<1x8xf32>
    %cst_16 = arith.constant 1.000000e+00 : f32
    %34 = vector.broadcast %cst_16 : f32 to vector<1x8xf32>
    %35 = arith.mulf %34, %33 : vector<1x8xf32>
    %c0_17 = arith.constant 0 : index
    %c0_18 = arith.constant 0 : index
    %36 = vector.load %arg7[%c0_17, %c0_18] : memref<1x8xf32, #tpu.memory_space<vmem>>, vector<1x8xf32>
    tpu.vector_store %arg7[%c0_17, %c0_18], %35 {strides = array<i32>} : memref<1x8xf32, #tpu.memory_space<vmem>>, vector<1x8xf32>,
    return
  }
}

</mosaic_0001>

<bundles_post_ra>
// kernel: tpu_custom_call.1
= control target key start
LH: loop header
LB: loop body
LE: loop exit
PB: predicated region body
PF: predicated region fallthrough
CT: control target
= control target key end

     0   :  { %s1400_s0 = inlined_call_operand.vmem [shape: f32[8,2], index: 0, kind: input, shape index: {}]   ;;  %s1401_s1 = inlined_call_operand.vmem [shape: bf16[2,400], index: 1, kind: input, shape index: {}]   ;;  %s1402_s2 = inlined_call_operand.vmem [shape: f32[1,400], index: 2, kind: input, shape index: {}]   ;;  %s1403_s3 = inlined_call_operand.hbm [shape: bf16[400,300], index: 3, kind: input, shape index: {}]   ;;  %s1404_s4 = inlined_call_operand.vmem [shape: f32[1,300], index: 4, kind: input, shape index: {}]   ;;  %s1405_s5 = inlined_call_operand.vmem [shape: bf16[1,300], index: 5, kind: input, shape index: {}]   ;;  %s1406_s6 = inlined_call_operand.<no memory space> [shape: f32[1,1], index: 6, kind: input, shape index: {}]   ;;  %s1407_s7 = inlined_call_operand.hbm [shape: f32[1,8], index: 7, kind: output, shape index: {}]  }
   0x1   :  { %v12_v0 = vstv %s1406_s6 }
   0x2   :  { %13 = vst [vmem:[#allocation2] sm:$0x1] %v12_v0 }
   0x3   :  { %14 = vsyncpa [#allocation4], 0 }
   0x4   :  { %15 = vsyncpa [#allocation5], 0  ;;  %s1274_s26 = smov [#allocation3]  }
   0x5   :  { %s27_s27 = sshll.u32 %s1274_s26, 4  ;;  %s28_s27 = int_to_ptr.vmem [resolvable:$true] %s27_s27 }
   0x6   :  { %s1238_s28 = scalar_lea.vmem %s28_s27, 9600  ;;  %p1243_p1 = scmp.lt.s32.totalorder %s28_s27, %s28_s27 }
   0x7   :  { %p1239_p0 = scmp.ne.s32.totalorder %s28_s27, %s1238_s28  ;;  %p1244_p2 = scmp.lt.s32.totalorder %s1238_s28, %s1238_s28 }
   0x9   :  { %p1245_p3 = por %p1244_p2, %p1243_p1 }
   0xb   :  { %p1246_p4 = pnand %p1245_p3, %p1239_p0 }
   0xd   :  { %1249 = shalt.err (!%p1246_p4)
}
   0xe   :  { %s1275_s29 = smov 192   ;;  %s1276_s30 = smov 12  }
   0xf   :  { %33 = dma.hbm_to_vmem [thread:$0]  %s1403_s3, 9600, %s28_s27, [#allocation4], %s1275_s29, %s1275_s29, %s1276_s30  }
  0x10   :  { %1270 = dma.done.wait [#allocation4], 9600  }
  0x11   :  { %1271 = vsyncadd [#allocation4], 4294957696  ;;  %v1277_v1 = vmov 0   ;;  %v44_v2 = vld [vmem:[%s1400_s0] sm:$0xff]  ;;  %v1128_v3 = vld [vmem:[#allocation3 + $0xac] ss:$12 sps:$4 sm:$0xff]   ;;  %v53_v55 = vlaneseq }
  0x12   :  { %1124 = vset.pattern.permute.xlu0 %v1277_v1  ;;  %1126 = vset.pattern.permute.xlu1 %v1277_v1  ;;  %v1130_v4 = vld [vmem:[#allocation3 + $0xa8] ss:$12 sps:$4 sm:$0xff]   ;;  %v1133_v6 = vld [vmem:[#allocation3 + $0x90] ss:$12 sps:$4 sm:$0xff]   ;;  %v1278_v7 = vmov 1   ;;  %vm692_vm0 = vcmask 130048  }
  0x13   :  { %49 = vperm.xlu0 %1124, %v44_v2   ;;  %v1131_v5 = vld [vmem:[#allocation3 + $0x94] ss:$12 sps:$4 sm:$0xff]   ;;  %696 = vmatprep.subr.bf16.mxu0 %v1128_v3  ;;  %v1134_v8 = vld [vmem:[#allocation3 + $0x7c] ss:$12 sps:$4 sm:$0xff]   ;;  %v1136_v9 = vld [vmem:[#allocation3 + $0x78] ss:$12 sps:$4 sm:$0xff]  }
  0x14   :  { %697 = vmatpush1.bf16.msra.mxu0 %v1130_v4  ;;  %v1137_v10 = vld [vmem:[#allocation3 + $0x64] ss:$12 sps:$4 sm:$0xff]   ;;  %v1139_v11 = vld [vmem:[#allocation3 + $0x60] ss:$12 sps:$4 sm:$0xff]   ;;  %v1154_v13 = vld [vmem:[#allocation3 + $0x228] ss:$12 sps:$4 sm:$0xff]  }
  0x15   :  { %698 = vmatprep.subr.bf16.mxu0 %v1131_v5  ;;  %v1151_v12 = vld [vmem:[#allocation3 + $0x22c] ss:$12 sps:$4 sm:$0xff]   ;;  %v1157_v15 = vld [vmem:[#allocation3 + $0x214] ss:$12 sps:$4 sm:$0xff]   ;;  %v1160_v16 = vld [vmem:[#allocation3 + $0x210] ss:$12 sps:$4 sm:$0xff]  }
  0x16   :  { %v1140_v14 = vld [vmem:[#allocation3 + $0x4c] ss:$12 sps:$4 sm:$0xff]   ;;  %737 = vmatprep.subr.bf16.mxu1 %v1151_v12  ;;  %v1142_v17 = vld [vmem:[#allocation3 + $0x48] ss:$12 sps:$4 sm:$0xff]   ;;  %v1169_v21 = vld [vmem:[#allocation3 + $0x1e4] ss:$12 sps:$4 sm:$0xff]  }
  0x17   :  { %1125 = vset.pattern.permute.xlu0 %v1278_v7  ;;  %738 = vmatpush1.bf16.msra.mxu1 %v1154_v13  ;;  %v1163_v18 = vld [vmem:[#allocation3 + $0x1fc] ss:$12 sps:$4 sm:$0xff]   ;;  %v1143_v19 = vld [vmem:[#allocation3 + $0x34] ss:$12 sps:$4 sm:$0xff]   ;;  %v1166_v20 = vld [vmem:[#allocation3 + $0x1f8] ss:$12 sps:$4 sm:$0xff]  }
  0x18   :  { %94 = vperm.xlu0 %1125, %v44_v2   ;;  %699 = vmatpush1.bf16.msra.mxu0 %v1133_v6  ;;  %v1145_v22 = vld [vmem:[#allocation3 + $0x30] ss:$12 sps:$4 sm:$0xff]   ;;  %v1172_v24 = vld [vmem:[#allocation3 + $0x1e0] ss:$12 sps:$4 sm:$0xff]   ;;  %v1148_v26 = vld [vmem:[#allocation3 + $0x18] ss:$12 sps:$4 sm:$0xff]  }
  0x19   :  { %700 = vmatprep.subr.bf16.mxu0 %v1134_v8  ;;  %739 = vmatprep.subr.bf16.mxu1 %v1157_v15  ;;  %v1146_v23 = vld [vmem:[#allocation3 + $0x1c] ss:$12 sps:$4 sm:$0xff]   ;;  %v1175_v25 = vld [vmem:[#allocation3 + $0x1cc] ss:$12 sps:$4 sm:$0xff]   ;;  %v1149_v27 = vld [vmem:[#allocation3 + $0x4] ss:$12 sps:$4 sm:$0xff]  }
  0x1a   :  { %v1178_v28 = vld [vmem:[#allocation3 + $0x1c8] ss:$12 sps:$4 sm:$0xff]   ;;  %v1153_v30 = vld [vmem:[#allocation3] ss:$12 sps:$4 sm:$0xff]   ;;  %v1184_v32 = vld [vmem:[#allocation3 + $0x1b0] ss:$12 sps:$4 sm:$0xff]  }
  0x1b   :  { %740 = vmatpush1.bf16.msra.mxu1 %v1160_v16  ;;  %v1181_v29 = vld [vmem:[#allocation3 + $0x1b4] ss:$12 sps:$4 sm:$0xff]   ;;  %v1155_v31 = vld [vmem:[#allocation3 + $0x16c] ss:$12 sps:$4 sm:$0xff]   ;;  %v1187_v33 = vld [vmem:[#allocation3 + $0x19c] ss:$12 sps:$4 sm:$0xff]  }
  0x1c   :  { %1127 = vset.pattern.permute.xlu0 %v1277_v1  ;;  %701 = vmatpush1.bf16.msra.mxu0 %v1136_v9  ;;  %v1159_v34 = vld [vmem:[#allocation3 + $0x168] ss:$12 sps:$4 sm:$0xff]   ;;  %v1190_v36 = vld [vmem:[#allocation3 + $0x198] ss:$12 sps:$4 sm:$0xff]   ;;  %v1165_v38 = vld [vmem:[#allocation3 + $0x150] ss:$12 sps:$4 sm:$0xff]  }
  0x1d   :  { %702 = vmatprep.subr.bf16.mxu0 %v1137_v10  ;;  %741 = vmatprep.subr.bf16.mxu1 %v1163_v18  ;;  %v1161_v35 = vld [vmem:[#allocation3 + $0x154] ss:$12 sps:$4 sm:$0xff]   ;;  %v1193_v37 = vld [vmem:[#allocation3 + $0x184] ss:$12 sps:$4 sm:$0xff]   ;;  %v1167_v39 = vld [vmem:[#allocation3 + $0x13c] ss:$12 sps:$4 sm:$0xff]  }
  0x1e   :  { %v1196_v40 = vld [vmem:[#allocation3 + $0x180] ss:$12 sps:$4 sm:$0xff]   ;;  %v1199_v41 = vld [vmem:[#allocation3 + $0x244] ss:$12 sps:$4 sm:$0xff]   ;;  %v1183_v48 = vld [vmem:[#allocation3 + $0x108] ss:$12 sps:$4 sm:$0xff]  }
  0x1f   :  { %742 = vmatpush1.bf16.msra.mxu1 %v1166_v20  ;;  %v1171_v42 = vld [vmem:[#allocation3 + $0x138] ss:$12 sps:$4 sm:$0xff]   ;;  %v1202_v44 = vld [vmem:[#allocation3 + $0x240] ss:$12 sps:$4 sm:$0xff]   ;;  %v1203_v45 = vld [vmem:[#allocation3 + $0x170] ss:$12 sps:$4 sm:$0xff]  }
  0x20   :  { %703 = vmatpush1.bf16.msra.mxu0 %v1139_v11  ;;  %743 = vmatprep.subr.bf16.mxu1 %v1169_v21  ;;  %v1173_v43 = vld [vmem:[#allocation3 + $0x124] ss:$12 sps:$4 sm:$0xff]   ;;  %v1177_v46 = vld [vmem:[#allocation3 + $0x120] ss:$12 sps:$4 sm:$0xff]   ;;  %v1191_v51 = vld [vmem:[#allocation3 + $0xdc] ss:$12 sps:$4 sm:$0xff]  }
  0x21   :  { %704 = vmatprep.subr.bf16.mxu0 %v1140_v14  ;;  %v1179_v47 = vld [vmem:[#allocation3 + $0x10c] ss:$12 sps:$4 sm:$0xff]   ;;  %v1185_v49 = vld [vmem:[#allocation3 + $0xf4] ss:$12 sps:$4 sm:$0xff]   ;;  %v1189_v50 = vld [vmem:[#allocation3 + $0xf0] ss:$12 sps:$4 sm:$0xff]  }
  0x22   :  { %v1195_v52 = vld [vmem:[#allocation3 + $0xd8] ss:$12 sps:$4 sm:$0xff]   ;;  %v1201_v54 = vld [vmem:[#allocation3 + $0xc0] ss:$12 sps:$4 sm:$0xff]   ;;  %v1336_v56 = vshrl.u32 %v53_v55, 7  ;;  %vm1281_vm1 = vmmov 0  }
  0x23   :  { %744 = vmatpush1.bf16.msra.mxu1 %v1172_v24  ;;  %v1197_v53 = vld [vmem:[#allocation3 + $0xc4] ss:$12 sps:$4 sm:$0xff]   ;;  %v45_v57 = vld [vmem:[%s1401_s1] sm:$0xf]  ;;  %vm901_vm2 = vcmask 359424   ;;  %vm989_vm3 = vcmask 57344  }
  0x24   :  { %705 = vmatpush1.bf16.msra.mxu0 %v1142_v17  ;;  %745 = vmatprep.subr.bf16.mxu1 %v1175_v25  ;;  %v1342_v58 = vsub.s32 0, %v1336_v56  ;;  %v46_v59 = vunpack.c.l.bf16 %v45_v57  ;;  %v1345_v60 = vsub.s32 2, %v1336_v56  ;;  %v63_v61 = vsub.s32 4, %v1336_v56  ;;  %v141_v17 = vld [vmem:[%s1402_s2] sm:$0xf] }
  0x25   :  { %706 = vmatprep.subr.bf16.mxu0 %v1143_v19  ;;  %v67_v62 = vsub.s32 6, %v1336_v56  ;;  %v1350_v63 = vsub.s32 1, %v1336_v56  ;;  %v103_v0 = vsub.s32 3, %v1336_v56  ;;  %v107_v2 = vsub.s32 5, %v1336_v56  ;;  %v1208_v55 = vld [vmem:[#allocation3 + $0x218] ss:$12 sps:$4 sm:$0xff]  }
  0x26   :  { %v111_v3 = vsub.s32 7, %v1336_v56  ;;  %v56_v4 = vrot.slane %v46_v59, %v1342_v58  ;;  %v60_v5 = vrot.slane %v46_v59, %v1345_v60  ;;  %v64_v6 = vrot.slane %v46_v59, %v63_v61  ;;  %v1209_v57 = vld [vmem:[#allocation3 + $0x140] ss:$12 sps:$4 sm:$0xff]  }
  0x27   :  { %746 = vmatpush1.bf16.msra.mxu1 %v1178_v28  ;;  %v68_v7 = vrot.slane %v46_v59, %v67_v62  ;;  %v100_v8 = vrot.slane %v46_v59, %v1350_v63  ;;  %v104_v9 = vrot.slane %v46_v59, %v103_v0  ;;  %v108_v10 = vrot.slane %v46_v59, %v107_v2  ;;  %v1211_v61 = vld [vmem:[#allocation3 + $0x200] ss:$12 sps:$4 sm:$0xff]   ;;  %v1212_v62 = vld [vmem:[#allocation3 + $0x128] ss:$12 sps:$4 sm:$0xff]  }
  0x28   :  { %707 = vmatpush1.bf16.msra.mxu0 %v1145_v22  ;;  %747 = vmatprep.subr.bf16.mxu1 %v1181_v29  ;;  %v112_v11 = vrot.slane %v46_v59, %v111_v3  ;;  %v76_v13 = vrot.slane %v56_v4, %v1342_v58  ;;  %v80_v14 = vrot.slane %v60_v5, %v1342_v58  ;;  %v1210_v59 = vld [vmem:[#allocation3 + $0x80] ss:$12 sps:$4 sm:$0xff]   ;;  %v1214_v2 = vld [vmem:[#allocation3 + $0x1e8] ss:$12 sps:$4 sm:$0xff]   ;;  %v1215_v3 = vld [vmem:[#allocation3 + $0x110] ss:$12 sps:$4 sm:$0xff]  }
  0x29   :  { %708 = vmatprep.subr.bf16.mxu0 %v1146_v23  ;;  %v84_v15 = vrot.slane %v64_v6, %v1342_v58  ;;  %v88_v16 = vrot.slane %v68_v7, %v1342_v58  ;;  %v120_v18 = vrot.slane %v100_v8, %v1350_v63  ;;  %v124_v19 = vrot.slane %v104_v9, %v1350_v63  ;;  %v1216_v4 = vld [vmem:[#allocation3 + $0x50] ss:$12 sps:$4 sm:$0xff]   ;;  %v1218_v6 = vld [vmem:[#allocation3 + $0xf8] ss:$12 sps:$4 sm:$0xff]   ;;  %v1221_v9 = vld [vmem:[#allocation3 + $0xe0] ss:$12 sps:$4 sm:$0xff]  }
  0x2a   :  { %v128_v20 = vrot.slane %v108_v10, %v1350_v63  ;;  %v132_v21 = vrot.slane %v112_v11, %v1350_v63  ;;  %v150_v22 = vrot.slane %v141_v17, %v1350_v63  ;;  %v158_v23 = vrot.slane %v141_v17, %v103_v0  ;;  %v1213_v0 = vld [vmem:[#allocation3 + $0x68] ss:$12 sps:$4 sm:$0xff]   ;;  %v1217_v5 = vld [vmem:[#allocation3 + $0x1d0] ss:$12 sps:$4 sm:$0xff]   ;;  %v1219_v7 = vld [vmem:[#allocation3 + $0x38] ss:$12 sps:$4 sm:$0xff]  }
  0x2b   :  { %748 = vmatpush1.bf16.msra.mxu1 %v1184_v32  ;;  %v146_v24 = vrot.slane %v141_v17, %v1342_v58  ;;  %v154_v25 = vrot.slane %v141_v17, %v1345_v60  ;;  %v1220_v8 = vld [vmem:[#allocation3 + $0x1b8] ss:$12 sps:$4 sm:$0xff]   ;;  %v1222_v10 = vld [vmem:[#allocation3 + $0x20] ss:$12 sps:$4 sm:$0xff]  }
  0x2c   :  { %709 = vmatpush1.bf16.msra.mxu0 %v1148_v26  ;;  %749 = vmatprep.subr.bf16.mxu1 %v1187_v33  ;;  %v1223_v11 = vld [vmem:[#allocation3 + $0x1a0] ss:$12 sps:$4 sm:$0xff]  }
  0x2d   :  { %710 = vmatprep.subr.bf16.mxu0 %v1149_v27 }
  0x2f   :  { %750 = vmatpush1.bf16.msra.mxu1 %v1190_v36 }
  0x30   :  { %711 = vmatpush1.bf16.msra.mxu0 %v1153_v30  ;;  %751 = vmatprep.subr.bf16.mxu1 %v1193_v37 }
  0x31   :  { %712 = vmatprep.subr.bf16.mxu0 %v1155_v31 }
  0x33   :  { %752 = vmatpush1.bf16.msra.mxu1 %v1196_v40 }
  0x34   :  { %713 = vmatpush2.bf16.msra.mxu0 %v1159_v34  ;;  %767 = vmatprep.subr.bf16.mxu1 %v1199_v41 }
  0x35   :  { %714 = vmatprep.subr.bf16.mxu0 %v1161_v35 }
  0x37   :  { %768 = vmatpush2.bf16.msra.mxu1 %v1202_v44 }
  0x38   :  { %715 = vmatpush2.bf16.msra.mxu0 %v1165_v38  ;;  %1085 = vmatprep.subr.bf16.mxu1 %v1203_v45 }
  0x39   :  { %716 = vmatprep.subr.bf16.mxu0 %v1167_v39 }
  0x3c   :  { %717 = vmatpush2.bf16.msra.mxu0 %v1171_v42 }
  0x3d   :  { %718 = vmatprep.subr.bf16.mxu0 %v1173_v43 }
  0x40   :  { %719 = vmatpush2.bf16.msra.mxu0 %v1177_v46 }
  0x41   :  { %720 = vmatprep.subr.bf16.mxu0 %v1179_v47 }
  0x44   :  { %721 = vmatpush2.bf16.msra.mxu0 %v1183_v48 }
  0x45   :  { %722 = vmatprep.subr.bf16.mxu0 %v1185_v49 }
  0x48   :  { %723 = vmatpush2.bf16.msra.mxu0 %v1189_v50 }
  0x49   :  { %724 = vmatprep.subr.bf16.mxu0 %v1191_v51  ;;  %v1204_v51 = vld [vmem:[#allocation3 + $0xb0] ss:$12 sps:$4 sm:$0xff]  }
  0x4c   :  { %725 = vmatpush2.bf16.msra.mxu0 %v1195_v52  ;;  %v1205_v52 = vld [vmem:[#allocation3 + $0x230] ss:$12 sps:$4 sm:$0xff]  }
  0x4d   :  { %726 = vmatprep.subr.bf16.mxu0 %v1197_v53  ;;  %v1206_v53 = vld [vmem:[#allocation3 + $0x158] ss:$12 sps:$4 sm:$0xff]  }
  0x50   :  { %727 = vmatpush2.bf16.msra.mxu0 %v1201_v54  ;;  %v1207_v54 = vld [vmem:[#allocation3 + $0x98] ss:$12 sps:$4 sm:$0xff]  }
  0x51   :  { %818 = vmatprep.subr.bf16.mxu0 %v1277_v1 }
  0x8e   :  { %v50_v12 = vpop.permute.xlu0 %49 }
  0x8f   :  { %v89_v26 = vmul.f32 %v76_v13, %v50_v12  ;;  %v90_v27 = vmul.f32 %v80_v14, %v50_v12  ;;  %v91_v28 = vmul.f32 %v84_v15, %v50_v12  ;;  %v92_v29 = vmul.f32 %v88_v16, %v50_v12  ;;  %v1224_v12 = vld [vmem:[#allocation3 + $0xc8] ss:$12 sps:$4 sm:$0xff]  }
  0x90   :  { %v1225_v13 = vld [vmem:[#allocation3 + $0x8] ss:$12 sps:$4 sm:$0xff]   ;;  %v1279_v16 = vmov 1966171168  }
  0x91   :  { %v1226_v14 = vld [vmem:[#allocation3 + $0x188] ss:$12 sps:$4 sm:$0xff]   ;;  %v885_v17 = vunpack.c.l.s4 %v1279_v16 }
  0x92   :  { %v1227_v15 = vld [vmem:[#allocation3 + $0x248] ss:$12 sps:$4 sm:$0xff]  }
  0x93   :  { %v95_v30 = vpop.permute.xlu0 %94 }
  0x94   :  { %v133_v31 = vmul.f32 %v120_v18, %v95_v30  ;;  %v134_v32 = vmul.f32 %v124_v19, %v95_v30  ;;  %v135_v33 = vmul.f32 %v128_v20, %v95_v30  ;;  %v136_v34 = vmul.f32 %v132_v21, %v95_v30  ;;  %v1083_v19 = vld.sshfl [vmem:[%s1405_s5] sm:$0x13 pattern:$0x75316420] }
  0x95   :  { %v886_v18 = vunpack.c.0.s8 %v885_v17  ;;  %v883_v20 = vcombine.high %v1083_v19, %v1083_v19 }
  0x96   :  { %v137_v35 = vadd.f32 %v133_v31, %v89_v26  ;;  %v139_v36 = vadd.f32 %v135_v33, %v91_v28  ;;  %v138_v37 = vadd.f32 %v134_v32, %v90_v27  ;;  %v140_v38 = vadd.f32 %v136_v34, %v92_v29 }
  0x97   :  { %v889_v21 = vsub.s32 %v886_v18, %v1336_v56 }
  0x98   :  { %v164_v39 = vadd.f32 %v150_v22, %v138_v37  ;;  %v166_v40 = vadd.f32 %v158_v23, %v140_v38  ;;  %v163_v41 = vadd.f32 %v146_v24, %v137_v35  ;;  %v165_v42 = vadd.f32 %v154_v25, %v139_v36  ;;  %v865_v24 = vld [vmem:[#allocation2] sm:$0x1] }
  0x99   :  { %v897_v22 = vrot.slane %v883_v20, %v889_v21  ;;  %v890_v23 = vrot.slane %v1083_v19, %v889_v21  ;;  %868 = vperm.xlu1 %1126, %v865_v24  }
  0x9a   :  { %v168_v43 = vmax.f32 %v164_v39, 0.0  ;;  %v170_v44 = vmax.f32 %v166_v40, 0.0  ;;  %v167_v45 = vmax.f32 %v163_v41, 0.0  ;;  %v169_v46 = vmax.f32 %v165_v42, 0.0 }
  0x9b   :  { %v1280_v42 = vmov 0.0  }
  0x9c   :  { %v172_v47 = vpack.c.bf16 %v168_v43, %v168_v43  ;;  %v174_v48 = vpack.c.bf16 %v170_v44, %v170_v44  ;;  %v171_v49 = vpack.c.bf16 %v167_v45, %v167_v45  ;;  %v1372_v50 = vpack.c.bf16 %v169_v46, %v169_v46 }
  0x9e   :  { %728 = vmatprep.mubr.bf16.mxu0 %v172_v47  ;;  %1081 = vmatprep.mubr.msk.bf16.mxu1 %vm692_vm0, %v174_v48 }
  0x9f   :  { %729 = vmatmul.mubr.bf16.vlgmr.msra.gmra.mxu0 %v171_v49  ;;  %770 = vmatmul.mubr.bf16.vlgmr.msra.gmra.mxu1 %v1372_v50 }
  0xa0   :  { %1086 = vmatpush3.bf16.msra.mxu1 %v1204_v51  ;;  %819 = vmatpush1.bf16.msra.mxu0 %v1205_v52 }
  0xa1   :  { %810 = vmatprep.mubr.bf16.mxu1 %v172_v47  ;;  %1082 = vmatprep.mubr.msk.bf16.mxu0 %vm692_vm0, %v174_v48 }
  0xa2   :  { %1087 = vmatprep.subr.bf16.mxu1 %v1206_v53  ;;  %820 = vmatprep.subr.bf16.mxu0 %v1277_v1 }
  0xa4   :  { %1088 = vmatpush3.bf16.msra.mxu1 %v1207_v54  ;;  %821 = vmatpush1.bf16.msra.mxu0 %v1208_v55 }
  0xa5   :  { %1089 = vmatprep.subr.bf16.mxu1 %v1209_v57  ;;  %822 = vmatprep.subr.bf16.mxu0 %v1277_v1 }
  0xa8   :  { %1090 = vmatpush3.bf16.msra.mxu1 %v1210_v59  ;;  %823 = vmatpush1.bf16.msra.mxu0 %v1211_v61  ;;  %v898_v59 = vcombine.high %v890_v23, %v890_v23 }
  0xa9   :  { %1091 = vmatprep.subr.bf16.mxu1 %v1212_v62  ;;  %824 = vmatprep.subr.bf16.mxu0 %v1277_v1 }
  0xac   :  { %1092 = vmatpush3.bf16.msra.mxu1 %v1213_v0  ;;  %825 = vmatpush1.bf16.msra.mxu0 %v1214_v2 }
  0xad   :  { %1093 = vmatprep.subr.bf16.mxu1 %v1215_v3  ;;  %826 = vmatprep.subr.bf16.mxu0 %v1277_v1 }
  0xb0   :  { %1094 = vmatpush3.bf16.msra.mxu1 %v1216_v4  ;;  %827 = vmatpush1.bf16.msra.mxu0 %v1217_v5 }
  0xb1   :  { %1095 = vmatprep.subr.bf16.mxu1 %v1218_v6  ;;  %828 = vmatprep.subr.bf16.mxu0 %v1277_v1 }
  0xb4   :  { %1096 = vmatpush3.bf16.msra.mxu1 %v1219_v7  ;;  %829 = vmatpush1.bf16.msra.mxu0 %v1220_v8 }
  0xb5   :  { %1097 = vmatprep.subr.bf16.mxu1 %v1221_v9  ;;  %830 = vmatprep.subr.bf16.mxu0 %v1277_v1 }
  0xb8   :  { %1098 = vmatpush3.bf16.msra.mxu1 %v1222_v10  ;;  %831 = vmatpush1.bf16.msra.mxu0 %v1223_v11 }
  0xb9   :  { %1099 = vmatprep.subr.bf16.mxu1 %v1224_v12  ;;  %832 = vmatprep.subr.bf16.mxu0 %v1277_v1 }
  0xbc   :  { %1100 = vmatpush3.bf16.msra.mxu1 %v1225_v13  ;;  %833 = vmatpush1.bf16.msra.mxu0 %v1226_v14 }
  0xbd   :  { %848 = vmatprep.subr.bf16.mxu0 %v1277_v1  ;;  %v275_v1 = vld [vmem:[%s1404_s4] sm:$0x7]  ;;  %s1282_s4 = smov [#allocation6]  }
  0xbe   :  { %v280_v25 = vrot.slane %v275_v1, %v1342_v58  ;;  %v284_v26 = vrot.slane %v275_v1, %v1350_v63  ;;  %v288_v43 = vrot.slane %v275_v1, %v1345_v60  ;;  %s997_s5 = sshll.u32 %s1282_s4, 4  ;;  %s998_s5 = int_to_ptr.vmem [resolvable:$true] %s997_s5 }
  0xbf   :  { %811 = vmatmul.mubr.bf16.vlgmr.msra.gmra.mxu1 %v171_v49  ;;  %s1250_s15 = scalar_lea.vmem %s998_s5, 16  ;;  %s1254_s16 = scalar_lea.vmem %s998_s5, 32 }
  0xc0   :  { %849 = vmatpush2.bf16.msra.mxu0 %v1227_v15  ;;  %940 = vmatprep.mubr.bf16.mxu1 %v897_v22  ;;  %p1251_p5 = scmp.ne.s32.totalorder %s998_s5, %s1250_s15  ;;  %p1255_p6 = scmp.lt.s32.totalorder %s998_s5, %s998_s5 }
  0xc1   :  { %p1256_p7 = scmp.lt.s32.totalorder %s1254_s16, %s1250_s15 }
  0xc3   :  { %851 = vmatmul.mubr.bf16.vlgmr.msra.gmra.mxu0 %v1372_v50  ;;  %p1257_p8 = por %p1256_p7, %p1255_p6 }
  0xc5   :  { %p1258_p9 = pnand %p1257_p8, %p1251_p5 }
 0x114   :  { %v869_v2 = vpop.permute.xlu1 %868 }
 0x115   :  { %v874_v3 = vrot.slane %v869_v2, %v1342_v58 }
 0x15f   :  { %v730_v27 = vpop.f32.mrf.mxu0  ;;  %v771_v28 = vpop.f32.mrf.mxu1 }
 0x160   :  { %v731_v29 = vadd.f32 %v730_v27, %v280_v25 }
 0x161   :  { %v732_v30 = vpop.f32.mrf.mxu0  ;;  %v773_v31 = vpop.f32.mrf.mxu1 }
 0x162   :  { %v772_v32 = vadd.f32 %v771_v28, %v731_v29  ;;  %v733_v56 = vadd.f32 %v732_v30, %v284_v26 }
 0x163   :  { %v734_v33 = vpop.f32.mrf.mxu0  ;;  %v775_v34 = vpop.f32.mrf.mxu1 }
 0x164   :  { %v774_v35 = vadd.f32 %v773_v31, %v733_v56  ;;  %v858_v36 = vmax.f32 %v772_v32, 0.0 }
 0x165   :  { %v735_v37 = vpop.f32.mrf.mxu0  ;;  %v776_v38 = vpop.f32.mrf.mxu1 }
 0x166   :  { %v859_v39 = vmax.f32 %v774_v35, 0.0  ;;  %v862_v41 = vpack.c.bf16 %v858_v36, %v858_v36 }
 0x168   :  { %v863_v40 = vpack.c.bf16 %v859_v39, %v859_v39 }
 0x16a   :  { %922 = vmatprep.subr.bf16.mxu1 %v863_v40 }
 0x16b   :  { %923 = vmatpush1.bf16.xpose.msra.mxu1 %v862_v41 }
 0x16c   :  { %1109 = vmatprep.subr.bf16.mxu1 %v1280_v42 }
 0x172   :  { %941 = vmatmul.mubr.bf16.vlgmr.msra.gmra.mxu1 %v890_v23 }
 0x173   :  { %1111 = vmatprep.mubr.msk.bf16.mxu1 %vm1281_vm1, %v1280_v42 }
 0x17f   :  { %v1101_v63 = vpop.f32.mrf.mxu1 }
 0x181   :  { %v1102_v44 = vpop.f32.mrf.mxu1 }
 0x182   :  { %v1103_v45 = vadd.f32 %v1102_v44, %v1101_v63 }
 0x183   :  { %v1104_v46 = vpop.f32.mrf.mxu1  ;;  %v852_v47 = vpop.f32.mrf.mxu0 }
 0x184   :  { %v813_v48 = vadd.f32 %v1103_v45, %v288_v43 }
 0x185   :  { %v1105_v49 = vpop.f32.mrf.mxu1  ;;  %v854_v50 = vpop.f32.mrf.mxu0 }
 0x186   :  { %v853_v51 = vadd.f32 %v852_v47, %v813_v48 }
 0x187   :  { %v855_v52 = vpop.f32.mrf.mxu0 }
 0x188   :  { %v860_v53 = vmax.f32 %v853_v51, 0.0 }
 0x189   :  { %v856_v54 = vpop.f32.mrf.mxu0 }
 0x18a   :  { %v864_v55 = vpack.c.bf16 %v860_v53, %v860_v53 }
 0x18c   :  { %v906_v57 = vsel %vm901_vm2, %v864_v55, 0 }
 0x18d   :  { %1110 = vmatpush3.bf16.xpose.msra.mxu1 %v906_v57 }
 0x194   :  { %1112 = vmatmul.mubr.msk.bf16.vlgmr.msra.gmra.mxu1 %vm901_vm2, %v898_v59 }
 0x232   :  { %v942_v61 = vpop.f32.mrf.mxu1 }
 0x233   :  { %v943_v4 = vadd.f32 %v942_v61, %v874_v3 }
 0x234   :  { %v944_v62 = vpop.f32.mrf.mxu1 }
 0x236   :  { %v945_v60 = vpop.f32.mrf.mxu1 }
 0x238   :  { %v946_v0 = vpop.f32.mrf.mxu1 }
 0x254   :  { %v982_v5 = vpop.f32.mrf.mxu1 }
 0x255   :  { %v983_v6 = vadd.f32 %v982_v5, %v943_v4 }
 0x256   :  { %v1113_v7 = vpop.f32.mrf.mxu1 }
 0x257   :  { %1228 = vtanh.f32 %v983_v6 }
 0x258   :  { %v985_v8 = vpop.f32.mrf.mxu1 }
 0x25a   :  { %v1114_v9 = vpop.f32.mrf.mxu1 }
 0x264   :  { %v1229_v10 = vpop.eup %1228 }
 0x265   :  { %990 = vst.msk [vmem:[#allocation6] sm:$0x1] %vm989_vm3, %v1229_v10 }
 0x266   :  { %1261 = shalt.err (!%p1258_p9)
}
 0x267   :  { %1000 = dma.vmem_to_hbm [thread:$0]  %s998_s5, 16, %s1407_s7, [#allocation5]  }
 0x268   :  { %1272 = dma.done.wait [#allocation5], 16  }
 0x269   :  { %1273 = vsyncadd [#allocation5], 4294967280 }
 0x26a   :  { %1004 = vsyncpa [#allocation4], 1 }
 0x26b   :  { %1005 = vsyncpa [#allocation5], 1 }

</bundles_post_ra>
